<compile_context>
chip_gen: v5e
topology: v5e:2x2
jax: 0.10.0
libtpu: 0.0.40
codegen_flags: <defaults>
</compile_context>

<pallas_src>
import functools

import jax
import jax.numpy as jnp
from jax.experimental import pallas as pl
from jax.experimental.pallas import tpu as pltpu

EPS = 1e-7
LANE = 128


def _vmem_limit_bytes():
    """Scoped-VMEM limit to request: ~3/4 of physical, capped at 96 MiB."""
    try:
        cap = int(pltpu.get_tpu_info().vmem_capacity_bytes)
    except Exception:
        return None
    return min(96 * 1024 * 1024, (cap * 3) // 4)


def _multi_tc_chip():
    """Best-effort: v5e / v6e have one TensorCore per chip; default to True."""
    try:
        kind = jax.local_devices()[0].device_kind.lower()
    except Exception:
        return True
    single = any(s in kind for s in
                 ("v5e", "v5 lite", "v5lite", "v6e", "v6 lite", "v6lite"))
    return not single


def _dice_sums_kernel(o_ref, l_ref, num_ref, osum_ref, lsum_ref, *,
                      rows_per_block, total_rows, steps_per_split,
                      first_masked_step, needs_mask, keep_sublanes):
    """Accumulate per-(n,c) partial sums over (NC_TILE, R, 128) blocks."""
    p = pl.program_id(0)          # TensorCore split
    i = pl.program_id(2)          # reduction step within this split

    @pl.when(i == 0)
    def _init():
        num_ref[...] = jnp.zeros_like(num_ref)
        osum_ref[...] = jnp.zeros_like(osum_ref)
        lsum_ref[...] = jnp.zeros_like(lsum_ref)

    def _accumulate(o, l):
        prod = l * o
        if keep_sublanes:
            nc, r, lanes = o.shape
            shp = (nc, r // 8, 8, lanes)          # free, tile-aligned split
            num_ref[...] += jnp.sum(prod.reshape(shp), axis=1)[None]
            osum_ref[...] += jnp.sum(o.reshape(shp), axis=1)[None]
            lsum_ref[...] += jnp.sum(l.reshape(shp), axis=1)[None]
        else:
            # Tiny-spatial fallback (M < 8): single step, XLU cost negligible.
            num_ref[...] += jnp.sum(prod, axis=1)[None]
            osum_ref[...] += jnp.sum(o, axis=1)[None]
            lsum_ref[...] += jnp.sum(l, axis=1)[None]

    o = o_ref[...].astype(jnp.float32)   # detached "output"
    l = l_ref[...].astype(jnp.float32)   # one-hot label (any input dtype)

    if not needs_mask:
        _accumulate(o, l)
    else:
        t = p * steps_per_split + i      # global reduction step

        @pl.when(t < first_masked_step)
        def _steady():                   # hot path: no iota / selects
            _accumulate(o, l)

        @pl.when(t >= first_masked_step)
        def _edge():                     # ragged last block and/or phantom step
            valid = total_rows - t * rows_per_block
            ridx = jax.lax.broadcasted_iota(jnp.int32, o.shape, 1)
            keep = ridx < valid
            # Select (not multiply) so garbage/NaN in the overhang cannot leak.
            _accumulate(jnp.where(keep, o, 0.0), jnp.where(keep, l, 0.0))


def _per_class_sums(output, onehot_label, block_bytes=None, split=None):
    """Returns (sum(l*o), sum(o), sum(l)) per class, each of shape (C,)."""
    N, C, H, W = output.shape
    NC = N * C
    HW = H * W

    # Free reshapes of the contiguous NCHW layout (no transpose).
    out2 = output.reshape(NC, HW)
    lab2 = onehot_label.reshape(NC, HW)

    M = pl.cdiv(HW, LANE)                # 128-lane rows per (n, c) slab
    pad = M * LANE - HW
    if pad:
        # TODO(synk): uncommon path (H*W % 128 != 0).  A lane-masked in-kernel
        # variant would need a non-free (NC, M, 128) view of the ragged rows,
        # so we pay one pad copy here instead.
        out2 = jnp.pad(out2, ((0, 0), (0, pad)))
        lab2 = jnp.pad(lab2, ((0, 0), (0, pad)))
    out3 = out2.reshape(NC, M, LANE)     # free (row-major) reshape
    lab3 = lab2.reshape(NC, M, LANE)

    # --- Block sizing (generation-aware via VMEM capacity). -----------------
    vmem_limit = _vmem_limit_bytes()
    if block_bytes is None:
        if vmem_limit is None:
            block_bytes = 2 * 1024 * 1024    # fits every gen's default scoped VMEM
        else:
            # 2 inputs x 2 pipeline buffers + f32 temporaries must fit the
            # scoped limit: ~4 MiB/input on v7x, ~8 MiB/input on v5e/v6e.
            block_bytes = min(8 * 1024 * 1024,
                              max(1 * 1024 * 1024, vmem_limit // 12))
    blk_elems = max(8 * LANE, block_bytes // 4)   # budget in f32-equiv elements

    if M >= 8:
        keep_sublanes = True
        nc_cap = max(1, blk_elems // (8 * LANE))
        nc_tile = min(NC, nc_cap)                          # NC tiling guard
        r_cap = max(8, ((blk_elems // (nc_tile * LANE)) // 8) * 8)
        R = min((M // 8) * 8, r_cap)                       # multiple of 8, <= M
    else:
        keep_sublanes = False
        nc_cap = max(8, ((blk_elems // (M * LANE)) // 8) * 8)
        nc_tile = NC if NC <= nc_cap else nc_cap
        R = M
    nc_tiles = pl.cdiv(NC, nc_tile)
    grid_m = pl.cdiv(M, R)

    # --- 2-way TensorCore split of the reduction (v7x / megacore chips). ----
    if split is None:
        n_split = 2 if (grid_m >= 2 and _multi_tc_chip()) else 1
    else:
        n_split = max(1, min(int(split), grid_m))
    S = pl.cdiv(grid_m, n_split)

    # Steps that need masking: the ragged last valid block (M % R != 0) and/or
    # the phantom step created by the ceil-split when grid_m is odd.
    first_masked = grid_m - 1 if (M % R) != 0 else grid_m
    needs_mask = first_masked < n_split * S

    kernel = functools.partial(
        _dice_sums_kernel,
        rows_per_block=R, total_rows=M, steps_per_split=S,
        first_masked_step=first_masked, needs_mask=needs_mask,
        keep_sublanes=keep_sublanes)

    last_block = grid_m - 1

    def in_map(p, c, i):
        # Clamp the phantom step onto the last valid block; its contribution
        # is fully masked in-kernel, so the DMA just re-reads valid data.
        return (c, jnp.minimum(p * S + i, last_block), 0)

    if keep_sublanes:
        acc_shape = (n_split, NC, 8, LANE)
        acc_block = (1, nc_tile, 8, LANE)
        out_map = lambda p, c, i: (p, c, 0, 0)
        reduce_axes = (0, 2, 3)
    else:
        acc_shape = (n_split, NC, LANE)
        acc_block = (1, nc_tile, LANE)
        out_map = lambda p, c, i: (p, c, 0)
        reduce_axes = (0, 2)

    num, osum, lsum = pl.pallas_call(
        kernel,
        out_shape=[jax.ShapeDtypeStruct(acc_shape, jnp.float32)] * 3,
        grid_spec=pltpu.PrefetchScalarGridSpec(
            num_scalar_prefetch=0,
            grid=(n_split, nc_tiles, S),
            in_specs=[
                pl.BlockSpec((nc_tile, R, LANE), in_map),
                pl.BlockSpec((nc_tile, R, LANE), in_map),
            ],
            out_specs=[
                pl.BlockSpec(acc_block, out_map),
                pl.BlockSpec(acc_block, out_map),
                pl.BlockSpec(acc_block, out_map),
            ],
        ),
        compiler_params=pltpu.CompilerParams(
            dimension_semantics=("parallel", "parallel", "arbitrary"),
            vmem_limit_bytes=vmem_limit),
    )(out3, lab3)

    # Cheap glue: fold split axis, sublanes, lanes, and batch N.
    num = num.sum(axis=reduce_axes).reshape(N, C).sum(axis=0)
    osum = osum.sum(axis=reduce_axes).reshape(N, C).sum(axis=0)
    lsum = lsum.sum(axis=reduce_axes).reshape(N, C).sum(axis=0)
    return num, osum, lsum


@functools.partial(jax.jit, static_argnames=("dice_type", "block_bytes", "split"))
def dice_score(output, onehot_label, dice_type, block_bytes=None, split=None):
    numerator, out_sum, lab_sum = _per_class_sums(
        output, onehot_label, block_bytes=block_bytes, split=split)
    denominator = out_sum + lab_sum          # == sum(output + label) per class

    if dice_type == "micro":
        return (numerator * 2.0) / (denominator + EPS)                # (C,)
    elif dice_type == "macro":
        return 2.0 * jnp.sum(numerator) / jnp.sum(denominator + EPS)  # scalar
    elif dice_type == "weighted":
        class_freq = lab_sum
        weights = class_freq / jnp.sum(class_freq)
        return jnp.sum(((numerator * 2.0) / (denominator + EPS)) * weights)
    else:
        raise ValueError("Unknown F1 Score type: {}".format(dice_type))


def _reference(output, onehot_label, dice_type):
    """Pure-JAX reference replicating the PyTorch semantics."""
    num = jnp.sum(onehot_label * output, axis=(0, 2, 3))
    den = jnp.sum(output + onehot_label, axis=(0, 2, 3))
    if dice_type == "micro":
        return (2.0 * num) / (den + EPS)
    elif dice_type == "macro":
        return 2.0 * jnp.sum(num) / jnp.sum(den + EPS)
    else:  # weighted
        freq = jnp.sum(onehot_label, axis=(0, 2, 3))
        w = freq / jnp.sum(freq)
        return jnp.sum((2.0 * num / (den + EPS)) * w)


def _make_inputs(key, N, C, H, W):
    k_out, k_lab = jax.random.split(key)
    logits = jax.random.normal(k_out, (N, C, H, W), dtype=jnp.float32)
    output = jax.nn.softmax(logits, axis=1)          # "network output" (NCHW)
    class_map = jax.random.randint(k_lab, (N, H, W), 0, C)
    onehot = jnp.transpose(
        jax.nn.one_hot(class_map, C, dtype=jnp.float32), (0, 3, 1, 2))
    return output, onehot


if __name__ == "__main__":
    failures = []

    def check(tag, output, label, **kw):
        for dt in ("micro", "macro", "weighted"):
            got = jax.block_until_ready(dice_score(output, label, dt, **kw))
            want = _reference(output, label.astype(jnp.float32), dt)
            if not jnp.allclose(got, want, rtol=1e-5, atol=1e-5):
                failures.append(f"{tag}/{dt}: {got} vs {want}")

    # 1) Primary small shape, default (auto) tiling.
    out1, lab1 = _make_inputs(jax.random.PRNGKey(0), 2, 4, 16, 16)
    check("2x4x16x16", out1, lab1)

    # 2) Same data, int8 one-hot label (reduced label HBM traffic path).
    check("2x4x16x16-int8", out1, lab1.astype(jnp.int8))

    # 3) Larger spatial, forced small blocks: multi-step reduction, ragged
    #    last block, 2-way split with a masked phantom step.
    out2, lab2 = _make_inputs(jax.random.PRNGKey(1), 2, 4, 64, 80)
    check("2x4x64x80-blk64k", out2, lab2, block_bytes=64 * 1024, split=2)

    # 4) Same data, even smaller blocks: NC tiling + phantom-only masking.
    check("2x4x64x80-blk16k", out2, lab2, block_bytes=16 * 1024, split=2)

    if failures:
        for f in failures:
            print("MISMATCH:", f)
    else:
        print("KERNEL_OK")
</pallas_src>

<mosaic_0001>
module attributes {stable_mosaic.version = 11 : i64} {
  func.func @_dice_sums_kernel(%arg0: i32, %arg1: i32, %arg2: i32, %arg3: memref<8x2x128xf32, #tpu.memory_space<vmem>>, %arg4: memref<8x2x128xf32, #tpu.memory_space<vmem>>, %arg5: memref<1x8x128xf32, #tpu.memory_space<vmem>>, %arg6: memref<1x8x128xf32, #tpu.memory_space<vmem>>, %arg7: memref<1x8x128xf32, #tpu.memory_space<vmem>>) attributes {dimension_semantics = [#tpu.dimension_semantics<parallel>, #tpu.dimension_semantics<parallel>, #tpu.dimension_semantics<arbitrary>], iteration_bounds = array<i64: 1, 1, 1>, scalar_prefetch = 0 : i64, scratch_operands = 0 : i64, tpu.core_type = #tpu.core_type<tc>, window_params = [{transform_indices = @transform_0, window_bounds = array<i64: 8, 2, 128>}, {transform_indices = @transform_1, window_bounds = array<i64: 8, 2, 128>}, {transform_indices = @transform_2, window_bounds = array<i64: 1, 8, 128>}, {transform_indices = @transform_3, window_bounds = array<i64: 1, 8, 128>}, {transform_indices = @transform_4, window_bounds = array<i64: 1, 8, 128>}]} {
    %c0_i32 = arith.constant 0 : i32
    %0 = arith.cmpi eq, %arg2, %c0_i32 : i32
    %1 = arith.extui %0 : i1 to i32
    %c0_i32_0 = arith.constant 0 : i32
    %2 = arith.cmpi ne, %1, %c0_i32_0 : i32
    scf.if %2 {
      %cst_26 = arith.constant 0.000000e+00 : f32
      %21 = vector.broadcast %cst_26 : f32 to vector<1x8x128xf32>
      %c0_27 = arith.constant 0 : index
      %c0_28 = arith.constant 0 : index
      %c0_29 = arith.constant 0 : index
      %22 = vector.load %arg5[%c0_27, %c0_28, %c0_29] : memref<1x8x128xf32, #tpu.memory_space<vmem>>, vector<1x8x128xf32>
      tpu.vector_store %arg5[%c0_27, %c0_28, %c0_29], %21 {strides = array<i32>} : memref<1x8x128xf32, #tpu.memory_space<vmem>>, vector<1x8x128xf32>,
      %cst_30 = arith.constant 0.000000e+00 : f32
      %23 = vector.broadcast %cst_30 : f32 to vector<1x8x128xf32>
      %c0_31 = arith.constant 0 : index
      %c0_32 = arith.constant 0 : index
      %c0_33 = arith.constant 0 : index
      %24 = vector.load %arg6[%c0_31, %c0_32, %c0_33] : memref<1x8x128xf32, #tpu.memory_space<vmem>>, vector<1x8x128xf32>
      tpu.vector_store %arg6[%c0_31, %c0_32, %c0_33], %23 {strides = array<i32>} : memref<1x8x128xf32, #tpu.memory_space<vmem>>, vector<1x8x128xf32>,
      %cst_34 = arith.constant 0.000000e+00 : f32
      %25 = vector.broadcast %cst_34 : f32 to vector<1x8x128xf32>
      %c0_35 = arith.constant 0 : index
      %c0_36 = arith.constant 0 : index
      %c0_37 = arith.constant 0 : index
      %26 = vector.load %arg7[%c0_35, %c0_36, %c0_37] : memref<1x8x128xf32, #tpu.memory_space<vmem>>, vector<1x8x128xf32>
      tpu.vector_store %arg7[%c0_35, %c0_36, %c0_37], %25 {strides = array<i32>} : memref<1x8x128xf32, #tpu.memory_space<vmem>>, vector<1x8x128xf32>,
    } else {
    }
    %c0 = arith.constant 0 : index
    %c0_1 = arith.constant 0 : index
    %c0_2 = arith.constant 0 : index
    %3 = vector.load %arg3[%c0, %c0_1, %c0_2] : memref<8x2x128xf32, #tpu.memory_space<vmem>>, vector<8x2x128xf32>
    %c0_3 = arith.constant 0 : index
    %c0_4 = arith.constant 0 : index
    %c0_5 = arith.constant 0 : index
    %4 = vector.load %arg4[%c0_3, %c0_4, %c0_5] : memref<8x2x128xf32, #tpu.memory_space<vmem>>, vector<8x2x128xf32>
    %5 = arith.mulf %4, %3 : vector<8x2x128xf32>
    %c0_6 = arith.constant 0 : index
    %c0_7 = arith.constant 0 : index
    %c0_8 = arith.constant 0 : index
    %6 = vector.load %arg5[%c0_6, %c0_7, %c0_8] : memref<1x8x128xf32, #tpu.memory_space<vmem>>, vector<1x8x128xf32>
    %cst = arith.constant dense<0.000000e+00> : vector<8x128xf32>
    %7 = vector.multi_reduction <add>, %5, %cst [1] : vector<8x2x128xf32> to vector<8x128xf32>
    %8 = vector.shape_cast %7 : vector<8x128xf32> to vector<1x8x128xf32>
    %9 = arith.addf %6, %8 : vector<1x8x128xf32>
    %c0_9 = arith.constant 0 : index
    %c0_10 = arith.constant 0 : index
    %c0_11 = arith.constant 0 : index
    %10 = vector.load %arg5[%c0_9, %c0_10, %c0_11] : memref<1x8x128xf32, #tpu.memory_space<vmem>>, vector<1x8x128xf32>
    tpu.vector_store %arg5[%c0_9, %c0_10, %c0_11], %9 {strides = array<i32>} : memref<1x8x128xf32, #tpu.memory_space<vmem>>, vector<1x8x128xf32>,
    %c0_12 = arith.constant 0 : index
    %c0_13 = arith.constant 0 : index
    %c0_14 = arith.constant 0 : index
    %11 = vector.load %arg6[%c0_12, %c0_13, %c0_14] : memref<1x8x128xf32, #tpu.memory_space<vmem>>, vector<1x8x128xf32>
    %cst_15 = arith.constant dense<0.000000e+00> : vector<8x128xf32>
    %12 = vector.multi_reduction <add>, %3, %cst_15 [1] : vector<8x2x128xf32> to vector<8x128xf32>
    %13 = vector.shape_cast %12 : vector<8x128xf32> to vector<1x8x128xf32>
    %14 = arith.addf %11, %13 : vector<1x8x128xf32>
    %c0_16 = arith.constant 0 : index
    %c0_17 = arith.constant 0 : index
    %c0_18 = arith.constant 0 : index
    %15 = vector.load %arg6[%c0_16, %c0_17, %c0_18] : memref<1x8x128xf32, #tpu.memory_space<vmem>>, vector<1x8x128xf32>
    tpu.vector_store %arg6[%c0_16, %c0_17, %c0_18], %14 {strides = array<i32>} : memref<1x8x128xf32, #tpu.memory_space<vmem>>, vector<1x8x128xf32>,
    %c0_19 = arith.constant 0 : index
    %c0_20 = arith.constant 0 : index
    %c0_21 = arith.constant 0 : index
    %16 = vector.load %arg7[%c0_19, %c0_20, %c0_21] : memref<1x8x128xf32, #tpu.memory_space<vmem>>, vector<1x8x128xf32>
    %cst_22 = arith.constant dense<0.000000e+00> : vector<8x128xf32>
    %17 = vector.multi_reduction <add>, %4, %cst_22 [1] : vector<8x2x128xf32> to vector<8x128xf32>
    %18 = vector.shape_cast %17 : vector<8x128xf32> to vector<1x8x128xf32>
    %19 = arith.addf %16, %18 : vector<1x8x128xf32>
    %c0_23 = arith.constant 0 : index
    %c0_24 = arith.constant 0 : index
    %c0_25 = arith.constant 0 : index
    %20 = vector.load %arg7[%c0_23, %c0_24, %c0_25] : memref<1x8x128xf32, #tpu.memory_space<vmem>>, vector<1x8x128xf32>
    tpu.vector_store %arg7[%c0_23, %c0_24, %c0_25], %19 {strides = array<i32>} : memref<1x8x128xf32, #tpu.memory_space<vmem>>, vector<1x8x128xf32>,
    return
  }
  func.func @transform_0(%arg0: i32, %arg1: i32, %arg2: i32) -> (i32, i32, i32) {
    %c1_i32 = arith.constant 1 : i32
    %0 = arith.muli %arg0, %c1_i32 : i32
    %1 = arith.addi %0, %arg2 : i32
    %c0_i32 = arith.constant 0 : i32
    %2 = arith.minsi %1, %c0_i32 : i32
    %c0_i32_0 = arith.constant 0 : i32
    %c0_i32_1 = arith.constant 0 : i32
    return %arg1, %2, %c0_i32_0 : i32, i32, i32
  }
  func.func @transform_1(%arg0: i32, %arg1: i32, %arg2: i32) -> (i32, i32, i32) {
    %c1_i32 = arith.constant 1 : i32
    %0 = arith.muli %arg0, %c1_i32 : i32
    %1 = arith.addi %0, %arg2 : i32
    %c0_i32 = arith.constant 0 : i32
    %2 = arith.minsi %1, %c0_i32 : i32
    %c0_i32_0 = arith.constant 0 : i32
    %c0_i32_1 = arith.constant 0 : i32
    return %arg1, %2, %c0_i32_0 : i32, i32, i32
  }
  func.func @transform_2(%arg0: i32, %arg1: i32, %arg2: i32) -> (i32, i32, i32) {
    %c0_i32 = arith.constant 0 : i32
    %c0_i32_0 = arith.constant 0 : i32
    return %arg0, %arg1, %c0_i32 : i32, i32, i32
  }
  func.func @transform_3(%arg0: i32, %arg1: i32, %arg2: i32) -> (i32, i32, i32) {
    %c0_i32 = arith.constant 0 : i32
    %c0_i32_0 = arith.constant 0 : i32
    return %arg0, %arg1, %c0_i32 : i32, i32, i32
  }
  func.func @transform_4(%arg0: i32, %arg1: i32, %arg2: i32) -> (i32, i32, i32) {
    %c0_i32 = arith.constant 0 : i32
    %c0_i32_0 = arith.constant 0 : i32
    return %arg0, %arg1, %c0_i32 : i32, i32, i32
  }
}

</mosaic_0001>

<bundles_post_ra>
// kernel: dice_score.1
= control target key start
LH: loop header
LB: loop body
LE: loop exit
PB: predicated region body
PF: predicated region fallthrough
CT: control target
= control target key end

     0   :  { %vm100_vm0 = vcmask 1041408   ;;  %vm165_vm1 = vcmask 1041409   ;;  %vm167_vm2 = vcmask 1042434   ;;  %vm169_vm3 = vcmask 1043459   ;;  %s548_s0 = inlined_call_operand.vmem [shape: f32[8,2,128], index: 0, kind: input, shape index: {}]   ;;  %s549_s1 = inlined_call_operand.vmem [shape: f32[8,2,128], index: 1, kind: input, shape index: {}]   ;;  %s550_s2 = inlined_call_operand.vmem [shape: f32[1,8,128], index: 2, kind: output, shape index: {0}]   ;;  %s551_s3 = inlined_call_operand.vmem [shape: f32[1,8,128], index: 3, kind: output, shape index: {1}]   ;;  %s552_s4 = inlined_call_operand.vmem [shape: f32[1,8,128], index: 4, kind: output, shape index: {2}]  }
   0x1   :  { %v385_v0 = vld [vmem:[%s548_s0] sm:$0x3]  ;;  %v390_v1 = vld [vmem:[%s548_s0 + $0x2] sm:$0x3]  ;;  %v395_v2 = vld [vmem:[%s548_s0 + $0x4] sm:$0x3] }
   0x2   :  { %v400_v3 = vld [vmem:[%s548_s0 + $0x6] sm:$0x3]  ;;  %v405_v4 = vld [vmem:[%s548_s0 + $0x8] sm:$0x3]  ;;  %v410_v5 = vld [vmem:[%s548_s0 + $0xa] sm:$0x3] }
   0x3   :  { %v415_v6 = vld [vmem:[%s548_s0 + $0xc] sm:$0x3]  ;;  %v420_v7 = vld [vmem:[%s548_s0 + $0xe] sm:$0x3]  ;;  %v425_v8 = vld [vmem:[%s549_s1] sm:$0x3] }
   0x4   :  { %v430_v9 = vld [vmem:[%s549_s1 + $0x2] sm:$0x3]  ;;  %v435_v10 = vld [vmem:[%s549_s1 + $0x4] sm:$0x3]  ;;  %v440_v11 = vld [vmem:[%s549_s1 + $0x6] sm:$0x3]  ;;  %v91_v12 = vmul.f32 %v425_v8, %v385_v0 }
   0x5   :  { %v447_v13 = vld [vmem:[%s549_s1 + $0x8] sm:$0x3]  ;;  %v452_v14 = vld [vmem:[%s549_s1 + $0xa] sm:$0x3]  ;;  %v457_v15 = vld [vmem:[%s549_s1 + $0xc] sm:$0x3]  ;;  %v92_v16 = vmul.f32 %v430_v9, %v390_v1  ;;  %v93_v17 = vmul.f32 %v435_v10, %v395_v2  ;;  %v94_v18 = vmul.f32 %v440_v11, %v400_v3 }
   0x6   :  { %v468_v19 = vld [vmem:[%s549_s1 + $0xe] sm:$0x3]  ;;  %v95_v20 = vmul.f32 %v447_v13, %v405_v4  ;;  %v96_v21 = vmul.f32 %v452_v14, %v410_v5  ;;  %v97_v22 = vmul.f32 %v457_v15, %v415_v6  ;;  %v101_v23 = vsel %vm100_vm0, %v91_v12, 0.0 }
   0x7   :  { %v98_v24 = vmul.f32 %v468_v19, %v420_v7  ;;  %v102_v25 = vrot.slane %v101_v23, 4  ;;  %v108_v26 = vsel %vm100_vm0, %v92_v16, 0.0  ;;  %v115_v27 = vsel %vm100_vm0, %v93_v17, 0.0 }
   0x8   :  { %v109_v28 = vrot.slane %v108_v26, 4  ;;  %v116_v29 = vrot.slane %v115_v27, 4  ;;  %v122_v30 = vsel %vm100_vm0, %v94_v18, 0.0  ;;  %v129_v31 = vsel %vm100_vm0, %v95_v20, 0.0 }
   0x9   :  { %v103_v32 = vadd.f32 %v102_v25, %v101_v23  ;;  %v123_v33 = vrot.slane %v122_v30, 4  ;;  %v130_v34 = vrot.slane %v129_v31, 4  ;;  %v136_v35 = vsel %vm100_vm0, %v96_v21, 0.0 }
   0xa   :  { %v110_v36 = vadd.f32 %v109_v28, %v108_v26  ;;  %v117_v37 = vadd.f32 %v116_v29, %v115_v27  ;;  %v137_v38 = vrot.slane %v136_v35, 4  ;;  %v143_v39 = vsel %vm100_vm0, %v97_v22, 0.0 }
   0xb   :  { %v104_v40 = vrot.slane %v103_v32, 2  ;;  %v124_v41 = vadd.f32 %v123_v33, %v122_v30  ;;  %v131_v42 = vadd.f32 %v130_v34, %v129_v31  ;;  %v144_v43 = vrot.slane %v143_v39, 4 }
   0xc   :  { %v111_v44 = vrot.slane %v110_v36, 2  ;;  %v118_v45 = vrot.slane %v117_v37, 2  ;;  %v138_v46 = vadd.f32 %v137_v38, %v136_v35  ;;  %v150_v47 = vsel %vm100_vm0, %v98_v24, 0.0 }
   0xd   :  { %v105_v48 = vadd.f32 %v104_v40, %v103_v32  ;;  %v125_v49 = vrot.slane %v124_v41, 2  ;;  %v132_v50 = vrot.slane %v131_v42, 2  ;;  %v145_v51 = vadd.f32 %v144_v43, %v143_v39 }
   0xe   :  { %v112_v52 = vadd.f32 %v111_v44, %v110_v36  ;;  %v119_v53 = vadd.f32 %v118_v45, %v117_v37  ;;  %v139_v54 = vrot.slane %v138_v46, 2  ;;  %v151_v55 = vrot.slane %v150_v47, 4 }
   0xf   :  { %v106_v56 = vrot.slane %v105_v48, 1  ;;  %v126_v57 = vadd.f32 %v125_v49, %v124_v41  ;;  %v133_v58 = vadd.f32 %v132_v50, %v131_v42  ;;  %v146_v59 = vrot.slane %v145_v51, 2 }
  0x10   :  { %v113_v60 = vrot.slane %v112_v52, 1  ;;  %v120_v61 = vrot.slane %v119_v53, 1  ;;  %v140_v62 = vadd.f32 %v139_v54, %v138_v46  ;;  %v152_v63 = vadd.f32 %v151_v55, %v150_v47 }
  0x11   :  { %v107_v12 = vadd.f32 %v106_v56, %v105_v48  ;;  %v127_v16 = vrot.slane %v126_v57, 1  ;;  %v134_v17 = vrot.slane %v133_v58, 1  ;;  %v147_v18 = vadd.f32 %v146_v59, %v145_v51 }
  0x12   :  { %v114_v20 = vadd.f32 %v113_v60, %v112_v52  ;;  %v121_v21 = vadd.f32 %v120_v61, %v119_v53  ;;  %v141_v22 = vrot.slane %v140_v62, 1  ;;  %v153_v23 = vrot.slane %v152_v63, 2 }
  0x13   :  { %v128_v24 = vadd.f32 %v127_v16, %v126_v57  ;;  %v135_v25 = vadd.f32 %v134_v17, %v133_v58  ;;  %v148_v26 = vrot.slane %v147_v18, 1  ;;  %vm171_vm4 = vcmask 1044484  }
  0x14   :  { %v142_v27 = vadd.f32 %v141_v22, %v140_v62  ;;  %v154_v28 = vadd.f32 %v153_v23, %v152_v63  ;;  %v166_v29 = vsel %vm165_vm1, %v114_v20, %v107_v12  ;;  %vm173_vm5 = vcmask 1045509  }
  0x15   :  { %v149_v30 = vadd.f32 %v148_v26, %v147_v18  ;;  %v168_v31 = vsel %vm167_vm2, %v121_v21, %v166_v29  ;;  %vm175_vm6 = vcmask 1046534   ;;  %vm177_vm7 = vcmask 1047559  }
  0x16   :  { %v155_v32 = vrot.slane %v154_v28, 1  ;;  %v170_v33 = vsel %vm169_vm3, %v128_v24, %v168_v31  ;;  %v183_v34 = vsel %vm100_vm0, %v385_v0, 0.0  ;;  %v190_v37 = vsel %vm100_vm0, %v390_v1, 0.0 }
  0x17   :  { %v172_v35 = vsel %vm171_vm4, %v135_v25, %v170_v33  ;;  %v184_v36 = vrot.slane %v183_v34, 4  ;;  %v197_v38 = vsel %vm100_vm0, %v395_v2, 0.0  ;;  %v191_v41 = vrot.slane %v190_v37, 4 }
  0x18   :  { %v156_v39 = vadd.f32 %v155_v32, %v154_v28  ;;  %v174_v40 = vsel %vm173_vm5, %v142_v27, %v172_v35  ;;  %v198_v42 = vrot.slane %v197_v38, 4  ;;  %v204_v0 = vsel %vm100_vm0, %v400_v3, 0.0 }
  0x19   :  { %v176_v43 = vsel %vm175_vm6, %v149_v30, %v174_v40  ;;  %v185_v44 = vadd.f32 %v184_v36, %v183_v34  ;;  %v211_v45 = vsel %vm100_vm0, %v405_v4, 0.0  ;;  %v192_v1 = vadd.f32 %v191_v41, %v190_v37 }
  0x1a   :  { %v178_v46 = vsel %vm177_vm7, %v156_v39, %v176_v43  ;;  %v199_v47 = vadd.f32 %v198_v42, %v197_v38  ;;  %v205_v48 = vrot.slane %v204_v0, 4  ;;  %v212_v49 = vrot.slane %v211_v45, 4 }
  0x1b   :  { %v186_v2 = vrot.slane %v185_v44, 2  ;;  %v218_v50 = vsel %vm100_vm0, %v410_v5, 0.0  ;;  %v193_v51 = vrot.slane %v192_v1, 2  ;;  %181 = vst [vmem:[%s550_s2] sm:$0xff] %v178_v46  ;;  %v225_v55 = vsel %vm100_vm0, %v415_v6, 0.0 }
  0x1c   :  { %v200_v52 = vrot.slane %v199_v47, 2  ;;  %v206_v53 = vadd.f32 %v205_v48, %v204_v0  ;;  %v219_v54 = vrot.slane %v218_v50, 4  ;;  %v213_v4 = vadd.f32 %v212_v49, %v211_v45 }
  0x1d   :  { %v187_v3 = vadd.f32 %v186_v2, %v185_v44  ;;  %v232_v56 = vsel %vm100_vm0, %v420_v7, 0.0  ;;  %v194_v57 = vadd.f32 %v193_v51, %v192_v1  ;;  %v226_v62 = vrot.slane %v225_v55, 4 }
  0x1e   :  { %v201_v58 = vadd.f32 %v200_v52, %v199_v47  ;;  %v207_v59 = vrot.slane %v206_v53, 2  ;;  %v220_v5 = vadd.f32 %v219_v54, %v218_v50  ;;  %v214_v61 = vrot.slane %v213_v4, 2 }
  0x1f   :  { %v188_v60 = vrot.slane %v187_v3, 1  ;;  %v233_v63 = vrot.slane %v232_v56, 4  ;;  %v195_v12 = vrot.slane %v194_v57, 1  ;;  %v227_v22 = vadd.f32 %v226_v62, %v225_v55 }
  0x20   :  { %v202_v16 = vrot.slane %v201_v58, 1  ;;  %v208_v17 = vadd.f32 %v207_v59, %v206_v53  ;;  %v221_v18 = vrot.slane %v220_v5, 2  ;;  %v215_v21 = vadd.f32 %v214_v61, %v213_v4 }
  0x21   :  { %v189_v20 = vadd.f32 %v188_v60, %v187_v3  ;;  %v234_v23 = vadd.f32 %v233_v63, %v232_v56  ;;  %v196_v6 = vadd.f32 %v195_v12, %v194_v57  ;;  %v228_v27 = vrot.slane %v227_v22, 2 }
  0x22   :  { %v203_v24 = vadd.f32 %v202_v16, %v201_v58  ;;  %v209_v25 = vrot.slane %v208_v17, 1  ;;  %v222_v7 = vadd.f32 %v221_v18, %v220_v5  ;;  %v216_v26 = vrot.slane %v215_v21, 1 }
  0x23   :  { %v235_v28 = vrot.slane %v234_v23, 2  ;;  %v258_v29 = vsel %vm100_vm0, %v425_v8, 0.0  ;;  %v247_v32 = vsel %vm165_vm1, %v196_v6, %v189_v20  ;;  %v229_v35 = vadd.f32 %v228_v27, %v227_v22 }
  0x24   :  { %v210_v30 = vadd.f32 %v209_v25, %v208_v17  ;;  %v223_v31 = vrot.slane %v222_v7, 1  ;;  %v259_v33 = vrot.slane %v258_v29, 4  ;;  %v217_v34 = vadd.f32 %v216_v26, %v215_v21 }
  0x25   :  { %v236_v36 = vadd.f32 %v235_v28, %v234_v23  ;;  %v248_v37 = vsel %vm167_vm2, %v203_v24, %v247_v32  ;;  %v265_v41 = vsel %vm100_vm0, %v430_v9, 0.0  ;;  %v230_v42 = vrot.slane %v229_v35, 1 }
  0x26   :  { %v224_v38 = vadd.f32 %v223_v31, %v222_v7  ;;  %v249_v39 = vsel %vm169_vm3, %v210_v30, %v248_v37  ;;  %v260_v40 = vadd.f32 %v259_v33, %v258_v29  ;;  %v266_v44 = vrot.slane %v265_v41, 4 }
  0x27   :  { %v237_v43 = vrot.slane %v236_v36, 1  ;;  %v250_v8 = vsel %vm171_vm4, %v217_v34, %v249_v39  ;;  %v272_v46 = vsel %vm100_vm0, %v435_v10, 0.0  ;;  %v279_v1 = vsel %vm100_vm0, %v440_v11, 0.0 }
  0x28   :  { %v251_v0 = vsel %vm173_vm5, %v224_v38, %v250_v8  ;;  %v261_v45 = vrot.slane %v260_v40, 2  ;;  %v231_v47 = vadd.f32 %v230_v42, %v229_v35  ;;  %v267_v2 = vadd.f32 %v266_v44, %v265_v41 }
  0x29   :  { %v238_v48 = vadd.f32 %v237_v43, %v236_v36  ;;  %v273_v49 = vrot.slane %v272_v46, 4  ;;  %v280_v9 = vrot.slane %v279_v1, 4  ;;  %v286_v51 = vsel %vm100_vm0, %v447_v13, 0.0 }
  0x2a   :  { %v262_v50 = vadd.f32 %v261_v45, %v260_v40  ;;  %v293_v52 = vsel %vm100_vm0, %v452_v14, 0.0  ;;  %v252_v53 = vsel %vm175_vm6, %v231_v47, %v251_v0  ;;  %v268_v54 = vrot.slane %v267_v2, 2 }
  0x2b   :  { %v274_v3 = vadd.f32 %v273_v49, %v272_v46  ;;  %v287_v10 = vrot.slane %v286_v51, 4  ;;  %v253_v4 = vsel %vm177_vm7, %v238_v48, %v252_v53  ;;  %v281_v55 = vadd.f32 %v280_v9, %v279_v1 }
  0x2c   :  { %v263_v11 = vrot.slane %v262_v50, 1  ;;  %v294_v56 = vrot.slane %v293_v52, 4  ;;  %v269_v57 = vadd.f32 %v268_v54, %v267_v2  ;;  %v300_v13 = vsel %vm100_vm0, %v457_v15, 0.0  ;;  %256 = vst [vmem:[%s551_s3] sm:$0xff] %v253_v4 }
  0x2d   :  { %v275_v58 = vrot.slane %v274_v3, 2  ;;  %v288_v59 = vadd.f32 %v287_v10, %v286_v51  ;;  %v282_v60 = vrot.slane %v281_v55, 2  ;;  %v301_v12 = vrot.slane %v300_v13, 4 }
  0x2e   :  { %v264_v5 = vadd.f32 %v263_v11, %v262_v50  ;;  %v295_v61 = vadd.f32 %v294_v56, %v293_v52  ;;  %v270_v14 = vrot.slane %v269_v57, 1  ;;  %v307_v18 = vsel %vm100_vm0, %v468_v19, 0.0 }
  0x2f   :  { %v276_v62 = vadd.f32 %v275_v58, %v274_v3  ;;  %v289_v63 = vrot.slane %v288_v59, 2  ;;  %v283_v16 = vadd.f32 %v282_v60, %v281_v55  ;;  %v302_v23 = vadd.f32 %v301_v12, %v300_v13 }
  0x30   :  { %v296_v17 = vrot.slane %v295_v61, 2  ;;  %v271_v20 = vadd.f32 %v270_v14, %v269_v57  ;;  %v308_v15 = vrot.slane %v307_v18, 4 }
  0x31   :  { %v277_v21 = vrot.slane %v276_v62, 1  ;;  %v290_v22 = vadd.f32 %v289_v63, %v288_v59  ;;  %v284_v6 = vrot.slane %v283_v16, 1  ;;  %v303_v26 = vrot.slane %v302_v23, 2 }
  0x32   :  { %v297_v24 = vadd.f32 %v296_v17, %v295_v61  ;;  %v322_v27 = vsel %vm165_vm1, %v271_v20, %v264_v5  ;;  %v309_v30 = vadd.f32 %v308_v15, %v307_v18 }
  0x33   :  { %v278_v25 = vadd.f32 %v277_v21, %v276_v62  ;;  %v291_v7 = vrot.slane %v290_v22, 1  ;;  %v285_v28 = vadd.f32 %v284_v6, %v283_v16  ;;  %v304_v32 = vadd.f32 %v303_v26, %v302_v23 }
  0x34   :  { %v298_v29 = vrot.slane %v297_v24, 1  ;;  %v310_v34 = vrot.slane %v309_v30, 2 }
  0x35   :  { %v292_v31 = vadd.f32 %v291_v7, %v290_v22  ;;  %v323_v33 = vsel %vm167_vm2, %v278_v25, %v322_v27  ;;  %v305_v36 = vrot.slane %v304_v32, 1 }
  0x36   :  { %v299_v19 = vadd.f32 %v298_v29, %v297_v24  ;;  %v324_v35 = vsel %vm169_vm3, %v285_v28, %v323_v33  ;;  %v311_v38 = vadd.f32 %v310_v34, %v309_v30 }
  0x37   :  { %v325_v37 = vsel %vm171_vm4, %v292_v31, %v324_v35  ;;  %v306_v40 = vadd.f32 %v305_v36, %v304_v32 }
  0x38   :  { %v326_v39 = vsel %vm173_vm5, %v299_v19, %v325_v37  ;;  %v312_v41 = vrot.slane %v311_v38, 1 }
  0x39   :  { %v327_v42 = vsel %vm175_vm6, %v306_v40, %v326_v39 }
  0x3a   :  { %v313_v43 = vadd.f32 %v312_v41, %v311_v38 }
  0x3c   :  { %v328_v8 = vsel %vm177_vm7, %v313_v43, %v327_v42 }
  0x3d   :  { %331 = vst [vmem:[%s552_s4] sm:$0xff] %v328_v8 }

</bundles_post_ra>
